<compile_context>
chip_gen: v6e
topology: v6e:2x2x1
jax: 0.10.0
libtpu: 0.0.40
codegen_flags: <defaults>
</compile_context>

<pallas_src>
import functools
import math

import numpy as np
import jax
import jax.numpy as jnp
from jax.experimental import pallas as pl
from jax.experimental.pallas import tpu as pltpu


def timesblock_conv_kernel(W, x_ref, w1_ref, b1_ref, w2_ref, b2_ref, o_ref):
    """Fused conv1(1xK) -> ReLU -> conv2(1xK) on TM flattened positions.

    x_ref : [TM, Cin]     bf16  raw flattened (b,h,w) positions (whole periods)
    w1_ref: [K*Cin, Dff]  bf16  tap-major conv1 weights
    b1_ref: [1, Dff]      f32
    w2_ref: [K*Dff, Cin]  bf16  tap-major conv2 weights
    b2_ref: [1, Cin]      f32
    o_ref : [TM, Cin]     bf16
    W is the period (row width).  TM is a multiple of W so every block holds
    whole (b, h) rows and a tap shift never has to cross a block boundary.
    """
    TM, Cin = x_ref.shape
    KC, Dff = w1_ref.shape
    K = KC // Cin
    left = (K - 1) // 2           # PyTorch 'same': left = (K-1)//2, right = K//2

    # Position of each flattened element inside its period window (for the
    # 'same'-padding boundary masks).
    pos = jax.lax.broadcasted_iota(jnp.int32, (TM, 1), 0) % W

    def tap_stack(v):
        """[TM, C] -> [TM, K*C]: K tap-shifted copies, lane-concatenated.
        Taps falling outside their period window are zeroed (== the implicit
        'same' zero padding).  Shifts are static slices + zero fill so they
        lower in both compiled and interpret modes."""
        TMv, C = v.shape
        cols = []
        for j in range(K):                     # K small & static -> unrolled
            s = j - left                       # tap j reads v[m + s]
            if s == 0:
                vj = v
            elif s > 0:
                vj = jnp.concatenate(
                    [v[s:], jnp.zeros((s, C), v.dtype)], axis=0)
                vj = jnp.where(pos < (W - s), vj, jnp.zeros_like(vj))
            else:
                vj = jnp.concatenate(
                    [jnp.zeros((-s, C), v.dtype), v[:TMv + s]], axis=0)
                vj = jnp.where(pos >= (-s), vj, jnp.zeros_like(vj))
            cols.append(vj)
        return jnp.concatenate(cols, axis=-1)

    # conv1: ONE MXU matmul with a K*Cin-deep contraction; bias + ReLU in f32.
    x = x_ref[...]                                               # bf16 [TM, Cin]
    h = jnp.dot(tap_stack(x), w1_ref[...],
                preferred_element_type=jnp.float32)
    h = jnp.maximum(h + b1_ref[...], 0.0)
    h = h.astype(jnp.bfloat16)        # single cast, hoisted out of the tap shifts

    # conv2: ONE MXU matmul with a K*Dff-deep contraction.
    y = jnp.dot(tap_stack(h), w2_ref[...],
                preferred_element_type=jnp.float32)
    o_ref[...] = (y + b2_ref[...]).astype(o_ref.dtype)
    # TODO(synk): a fully lane-dense [TR, W*Cin] output (sublane->lane relayout
    # in-kernel) would remove the remaining masked vst; bf16 output already
    # halves the store bytes.


def _block_rows(R, W, target_tm=2048):
    """Whole periods (rows of width W) per grid block.

    TM = TR*W must be a multiple of 16 (bf16 sublane tile) unless one block
    covers the whole (padded) array.  Prefer TM near `target_tm`, and >=2 grid
    steps (megacore sharding on v7x) when there are enough rows."""
    q = 16 // math.gcd(W, 16)              # TR granularity so TR*W % 16 == 0
    tr = max(q, ((target_tm // max(W, 1)) // q) * q)
    if tr >= R:
        half = -(-R // 2)                  # aim for 2 grid steps
        half = -(-half // q) * q           # round up to granularity
        tr = half if half < R else R       # else: one full-array block
    return tr


@functools.partial(jax.jit, static_argnames=("W", "TM"))
def conv_pallas(x_flat, w1_col, b1, w2_col, b2, *, W, TM):
    # TODO(synk): W is static per compile; data-dependent FFT periods trigger a
    # recompile per new period.  Period bucketing / scalar-prefetch W would
    # amortize this but needs runtime boundary masks; left out here.
    M, Cin = x_flat.shape
    KC, Dff = w1_col.shape
    KF, _ = w2_col.shape
    grid = (M // TM,)
    return pl.pallas_call(
        functools.partial(timesblock_conv_kernel, W),
        out_shape=jax.ShapeDtypeStruct((M, Cin), jnp.bfloat16),
        grid=grid,
        in_specs=[
            pl.BlockSpec((TM, Cin), lambda g: (g, 0)),     # raw rows, no im2col
            pl.BlockSpec((KC, Dff), lambda g: (0, 0)),     # resident 2-D weights
            pl.BlockSpec((1, Dff), lambda g: (0, 0)),
            pl.BlockSpec((KF, Cin), lambda g: (0, 0)),
            pl.BlockSpec((1, Cin), lambda g: (0, 0)),
        ],
        out_specs=pl.BlockSpec((TM, Cin), lambda g: (g, 0)),
        compiler_params=pltpu.CompilerParams(
            dimension_semantics=("parallel",),             # megacore-shardable
            # default scoped VMEM limit is plenty (few-MiB footprint) -- do not
            # over-request (v7x only has 64 MiB physical per TC).
        ),
    )(x_flat, w1_col, b1, w2_col, b2)


def fft_for_period(x, k):
    # Mirrors FFT_for_Period; the PyTorch code also pulls top-k indices to CPU,
    # so the periods are host-side constants here as well.
    B, T, N = x.shape
    xf = jnp.fft.rfft(x, axis=1)
    amp = jnp.abs(xf)                              # [B, F, N]
    freq = amp.mean(axis=0).mean(axis=-1)          # [F]
    freq = freq.at[0].set(0.0)
    F_ = freq.shape[0]
    k = min(k, F_ - 1)
    if k == 0:
        k = 1
    _, top = jax.lax.top_k(freq, k)
    top = np.asarray(top)                          # host sync (like .cpu().numpy())
    top = np.where(top == 0, 1, top)               # guard degenerate all-zero spectrum
    period = T // top
    period_weight = amp.mean(axis=-1)[:, top]      # [B, k]
    return period, period_weight


def conv_reference(rows, w1, b1, w2, b2):
    """Plain-JAX conv1 -> ReLU -> conv2 on [R, W, Cin] rows; numerically mirrors
    the Pallas kernel (bf16 operands, f32 accumulation, bf16 output)."""
    R, W, Cin = rows.shape
    K, _, Dff = w1.shape
    left = (K - 1) // 2
    right = K - 1 - left
    xp = jnp.pad(rows, ((0, 0), (left, right), (0, 0)))
    xp = xp.astype(jnp.bfloat16).astype(jnp.float32)
    w1f = w1.astype(jnp.bfloat16).astype(jnp.float32)
    w2f = w2.astype(jnp.bfloat16).astype(jnp.float32)
    h = jnp.zeros((R, W, Dff), jnp.float32)
    for j in range(K):
        h = h + jnp.einsum('rwc,cf->rwf', xp[:, j:j + W, :], w1f[j])
    h = jnp.maximum(h + b1[0], 0.0)
    hp = jnp.pad(h, ((0, 0), (left, right), (0, 0)))
    hp = hp.astype(jnp.bfloat16).astype(jnp.float32)
    y = jnp.zeros((R, W, Cin), jnp.float32)
    for j in range(K):
        y = y + jnp.einsum('rwf,fc->rwc', hp[:, j:j + W, :], w2f[j])
    y = y + b2[0]
    return y.astype(jnp.bfloat16).astype(jnp.float32)   # match bf16 kernel output


def timesblock_forward(x, params, seq_len, pred_len, top_k, use_pallas=True):
    B, T, N = x.shape
    total = seq_len + pred_len
    period_list, period_weight = fft_for_period(x, top_k)
    k = period_list.shape[0]

    w1 = params['w1']                                # [K, Cin, Dff] (per-tap in->out)
    w2 = params['w2']                                # [K, Dff, Cin]
    b1 = params['b1'].astype(jnp.float32)            # [1, Dff]
    b2 = params['b2'].astype(jnp.float32)            # [1, Cin]
    K, Cin, Dff = w1.shape
    w1_col = w1.reshape(K * Cin, Dff).astype(jnp.bfloat16)   # tap-major 2-D slab
    w2_col = w2.reshape(K * Dff, Cin).astype(jnp.bfloat16)   # tap-major 2-D slab

    res = []
    for i in range(k):
        period = int(period_list[i])
        if total % period != 0:
            length = (total // period + 1) * period
            pad = jnp.zeros((B, length - total, N), x.dtype)
            out = jnp.concatenate([x, pad], axis=1)
        else:
            length = total
            out = x
        H = length // period
        if use_pallas:
            M = B * length                           # flattened (b, h, w) positions
            R = B * H                                # whole (b, h) period rows
            TR = _block_rows(R, period)
            TM = TR * period
            M_pad = pl.cdiv(M, TM) * TM              # pad rows instead of divisor search
            x_flat = out.reshape(M, N).astype(jnp.bfloat16)
            if M_pad != M:
                x_flat = jnp.pad(x_flat, ((0, M_pad - M), (0, 0)))
            y = conv_pallas(x_flat, w1_col, b1, w2_col, b2, W=period, TM=TM)
            y = y[:M].astype(jnp.float32).reshape(B, length, N)
        else:
            rows = out.reshape(B * H, period, N)
            y = conv_reference(rows, w1, b1, w2, b2).reshape(B, length, N)
        res.append(y[:, :total, :])

    res = jnp.stack(res, axis=-1)                    # [B, T, N, k]
    pw = jax.nn.softmax(period_weight, axis=1)       # [B, k]
    out = jnp.sum(res * pw[:, None, None, :], axis=-1) + x
    return out


if __name__ == "__main__":
    configs = dict(seq_len=12, pred_len=4, top_k=2,
                   d_model=8, d_ff=16, num_kernels=3)
    B = 2
    T = configs['seq_len'] + configs['pred_len']

    key = jax.random.PRNGKey(0)
    kx, k1, k2, k3, k4 = jax.random.split(key, 5)

    x = jax.random.normal(kx, (B, T, configs['d_model']), dtype=jnp.float32)

    # Synthetic parameters: Conv2d weights reorganised per kernel tap as
    # [K, in_ch, out_ch]; biases as [1, out_ch].
    params = {
        'w1': 0.1 * jax.random.normal(
            k1, (configs['num_kernels'], configs['d_model'], configs['d_ff']),
            jnp.float32),
        'b1': 0.1 * jax.random.normal(k2, (1, configs['d_ff']), jnp.float32),
        'w2': 0.1 * jax.random.normal(
            k3, (configs['num_kernels'], configs['d_ff'], configs['d_model']),
            jnp.float32),
        'b2': 0.1 * jax.random.normal(k4, (1, configs['d_model']), jnp.float32),
    }

    out = timesblock_forward(x, params, configs['seq_len'], configs['pred_len'],
                             configs['top_k'], use_pallas=True)
    out = jax.block_until_ready(out)
    assert out.shape == (B, T, configs['d_model'])
    assert bool(jnp.all(jnp.isfinite(out)))

    # Correctness check against a plain-JAX reference of the same forward pass
    # (both use bf16 matmul operands / bf16 conv output, so only accumulation
    # order differs).
    ref = timesblock_forward(x, params, configs['seq_len'], configs['pred_len'],
                             configs['top_k'], use_pallas=False)
    ref = jax.block_until_ready(ref)
    np.testing.assert_allclose(np.asarray(out), np.asarray(ref),
                               rtol=2e-2, atol=2e-2)
    print("KERNEL_OK")
</pallas_src>

<mosaic_0001>
module attributes {stable_mosaic.version = 11 : i64} {
  func.func @timesblock_conv_kernel(%arg0: i32, %arg1: memref<16x8xbf16, #tpu.memory_space<vmem>>, %arg2: memref<24x16xbf16, #tpu.memory_space<vmem>>, %arg3: memref<1x16xf32, #tpu.memory_space<vmem>>, %arg4: memref<48x8xbf16, #tpu.memory_space<vmem>>, %arg5: memref<1x8xf32, #tpu.memory_space<vmem>>, %arg6: memref<16x8xbf16, #tpu.memory_space<vmem>>) attributes {dimension_semantics = [#tpu.dimension_semantics<parallel>], iteration_bounds = array<i64: 2>, scalar_prefetch = 0 : i64, scratch_operands = 0 : i64, tpu.core_type = #tpu.core_type<tc>, window_params = [{transform_indices = @transform_0, window_bounds = array<i64: 16, 8>}, {pipeline_mode = #tpu.pipeline_mode<synchronous>, transform_indices = @transform_1, window_bounds = array<i64: 24, 16>}, {pipeline_mode = #tpu.pipeline_mode<synchronous>, transform_indices = @transform_2, window_bounds = array<i64: 1, 16>}, {pipeline_mode = #tpu.pipeline_mode<synchronous>, transform_indices = @transform_3, window_bounds = array<i64: 48, 8>}, {pipeline_mode = #tpu.pipeline_mode<synchronous>, transform_indices = @transform_4, window_bounds = array<i64: 1, 8>}, {transform_indices = @transform_5, window_bounds = array<i64: 16, 8>}]} {
    %0 = tpu.iota {dimensions = array<i32: 0>} : vector<16x1xi32>
    %c4_i32 = arith.constant 4 : i32
    %c0_i32 = arith.constant 0 : i32
    %1 = arith.cmpi eq, %c4_i32, %c0_i32 : i32
    %c1_i32 = arith.constant 1 : i32
    %2 = arith.select %1, %c1_i32, %c4_i32 : i32
    %3 = vector.broadcast %2 : i32 to vector<16x1xi32>
    %4 = arith.remsi %0, %3 : vector<16x1xi32>
    %c0_i32_0 = arith.constant 0 : i32
    %5 = vector.broadcast %c0_i32_0 : i32 to vector<16x1xi32>
    %6 = arith.cmpi ne, %4, %5 : vector<16x1xi32>
    %c0_i32_1 = arith.constant 0 : i32
    %7 = vector.broadcast %c0_i32_1 : i32 to vector<16x1xi32>
    %8 = arith.cmpi slt, %4, %7 : vector<16x1xi32>
    %c0_i32_2 = arith.constant 0 : i32
    %9 = arith.cmpi slt, %2, %c0_i32_2 : i32
    %10 = vector.broadcast %9 : i1 to vector<16x1xi1>
    %11 = vector.broadcast %10 : vector<16x1xi1> to vector<16x1xi1>
    %12 = arith.xori %8, %11 : vector<16x1xi1>
    %13 = arith.andi %12, %6 : vector<16x1xi1>
    %14 = vector.broadcast %2 : i32 to vector<16x1xi32>
    %15 = arith.addi %4, %14 : vector<16x1xi32>
    %16 = arith.select %13, %15, %4 : vector<16x1xi1>, vector<16x1xi32>
    %c0 = arith.constant 0 : index
    %c0_3 = arith.constant 0 : index
    %17 = vector.load %arg1[%c0, %c0_3] : memref<16x8xbf16, #tpu.memory_space<vmem>>, vector<16x8xbf16>
    %cst = arith.constant 0.000000e+00 : bf16
    %18 = vector.broadcast %cst : bf16 to vector<1x8xbf16>
    %19 = vector.extract_strided_slice %17 {offsets = [0, 0], sizes = [15, 8], strides = [1, 1]} : vector<16x8xbf16> to vector<15x8xbf16>
    %20 = tpu.concatenate %18, %19 in 0 : vector<1x8xbf16>, vector<15x8xbf16> -> vector<16x8xbf16>
    %c1_i32_4 = arith.constant 1 : i32
    %21 = vector.broadcast %c1_i32_4 : i32 to vector<16x1xi32>
    %22 = arith.cmpi sge, %16, %21 : vector<16x1xi32>
    %cst_5 = arith.constant 0.000000e+00 : bf16
    %23 = vector.broadcast %cst_5 : bf16 to vector<16x8xbf16>
    %24 = vector.shape_cast %22 : vector<16x1xi1> to vector<16x1xi1>
    %25 = vector.broadcast %24 : vector<16x1xi1> to vector<16x8xi1>
    %26 = arith.select %25, %20, %23 : vector<16x8xi1>, vector<16x8xbf16>
    %27 = vector.extract_strided_slice %17 {offsets = [1, 0], sizes = [15, 8], strides = [1, 1]} : vector<16x8xbf16> to vector<15x8xbf16>
    %cst_6 = arith.constant 0.000000e+00 : bf16
    %28 = vector.broadcast %cst_6 : bf16 to vector<1x8xbf16>
    %29 = tpu.concatenate %27, %28 in 0 : vector<15x8xbf16>, vector<1x8xbf16> -> vector<16x8xbf16>
    %c3_i32 = arith.constant 3 : i32
    %30 = vector.broadcast %c3_i32 : i32 to vector<16x1xi32>
    %31 = arith.cmpi slt, %16, %30 : vector<16x1xi32>
    %cst_7 = arith.constant 0.000000e+00 : bf16
    %32 = vector.broadcast %cst_7 : bf16 to vector<16x8xbf16>
    %33 = vector.shape_cast %31 : vector<16x1xi1> to vector<16x1xi1>
    %34 = vector.broadcast %33 : vector<16x1xi1> to vector<16x8xi1>
    %35 = arith.select %34, %29, %32 : vector<16x8xi1>, vector<16x8xbf16>
    %36 = tpu.concatenate %26, %17, %35 in 1 : vector<16x8xbf16>, vector<16x8xbf16>, vector<16x8xbf16> -> vector<16x24xbf16>
    %c0_8 = arith.constant 0 : index
    %c0_9 = arith.constant 0 : index
    %37 = vector.load %arg2[%c0_8, %c0_9] : memref<24x16xbf16, #tpu.memory_space<vmem>>, vector<24x16xbf16>
    %cst_10 = arith.constant dense<0.000000e+00> : vector<16x16xf32>
    %38 = tpu.matmul %36, %37, %cst_10 {dimension_numbers = #tpu.dot_dimension_numbers<[1], [0], [0], [1], [0, 0, 1, 1], [], []>} : vector<16x24xbf16>, vector<24x16xbf16>, vector<16x16xf32> -> vector<16x16xf32>
    %c0_11 = arith.constant 0 : index
    %c0_12 = arith.constant 0 : index
    %39 = vector.load %arg3[%c0_11, %c0_12] : memref<1x16xf32, #tpu.memory_space<vmem>>, vector<1x16xf32>
    %40 = vector.broadcast %39 : vector<1x16xf32> to vector<16x16xf32>
    %41 = arith.addf %38, %40 : vector<16x16xf32>
    %cst_13 = arith.constant 0.000000e+00 : f32
    %42 = vector.broadcast %cst_13 : f32 to vector<16x16xf32>
    %43 = arith.maximumf %41, %42 : vector<16x16xf32>
    %44 = arith.truncf %43 : vector<16x16xf32> to vector<16x16xbf16>
    %cst_14 = arith.constant 0.000000e+00 : bf16
    %45 = vector.broadcast %cst_14 : bf16 to vector<1x16xbf16>
    %46 = vector.extract_strided_slice %44 {offsets = [0, 0], sizes = [15, 16], strides = [1, 1]} : vector<16x16xbf16> to vector<15x16xbf16>
    %47 = tpu.concatenate %45, %46 in 0 : vector<1x16xbf16>, vector<15x16xbf16> -> vector<16x16xbf16>
    %c1_i32_15 = arith.constant 1 : i32
    %48 = vector.broadcast %c1_i32_15 : i32 to vector<16x1xi32>
    %49 = arith.cmpi sge, %16, %48 : vector<16x1xi32>
    %cst_16 = arith.constant 0.000000e+00 : bf16
    %50 = vector.broadcast %cst_16 : bf16 to vector<16x16xbf16>
    %51 = vector.shape_cast %49 : vector<16x1xi1> to vector<16x1xi1>
    %52 = vector.broadcast %51 : vector<16x1xi1> to vector<16x16xi1>
    %53 = arith.select %52, %47, %50 : vector<16x16xi1>, vector<16x16xbf16>
    %54 = vector.extract_strided_slice %44 {offsets = [1, 0], sizes = [15, 16], strides = [1, 1]} : vector<16x16xbf16> to vector<15x16xbf16>
    %cst_17 = arith.constant 0.000000e+00 : bf16
    %55 = vector.broadcast %cst_17 : bf16 to vector<1x16xbf16>
    %56 = tpu.concatenate %54, %55 in 0 : vector<15x16xbf16>, vector<1x16xbf16> -> vector<16x16xbf16>
    %c3_i32_18 = arith.constant 3 : i32
    %57 = vector.broadcast %c3_i32_18 : i32 to vector<16x1xi32>
    %58 = arith.cmpi slt, %16, %57 : vector<16x1xi32>
    %cst_19 = arith.constant 0.000000e+00 : bf16
    %59 = vector.broadcast %cst_19 : bf16 to vector<16x16xbf16>
    %60 = vector.shape_cast %58 : vector<16x1xi1> to vector<16x1xi1>
    %61 = vector.broadcast %60 : vector<16x1xi1> to vector<16x16xi1>
    %62 = arith.select %61, %56, %59 : vector<16x16xi1>, vector<16x16xbf16>
    %63 = tpu.concatenate %53, %44, %62 in 1 : vector<16x16xbf16>, vector<16x16xbf16>, vector<16x16xbf16> -> vector<16x48xbf16>
    %c0_20 = arith.constant 0 : index
    %c0_21 = arith.constant 0 : index
    %64 = vector.load %arg4[%c0_20, %c0_21] : memref<48x8xbf16, #tpu.memory_space<vmem>>, vector<48x8xbf16>
    %cst_22 = arith.constant dense<0.000000e+00> : vector<16x8xf32>
    %65 = tpu.matmul %63, %64, %cst_22 {dimension_numbers = #tpu.dot_dimension_numbers<[1], [0], [0], [1], [0, 0, 1, 1], [], []>} : vector<16x48xbf16>, vector<48x8xbf16>, vector<16x8xf32> -> vector<16x8xf32>
    %c0_23 = arith.constant 0 : index
    %c0_24 = arith.constant 0 : index
    %66 = vector.load %arg5[%c0_23, %c0_24] : memref<1x8xf32, #tpu.memory_space<vmem>>, vector<1x8xf32>
    %67 = vector.broadcast %66 : vector<1x8xf32> to vector<16x8xf32>
    %68 = arith.addf %65, %67 : vector<16x8xf32>
    %69 = arith.truncf %68 : vector<16x8xf32> to vector<16x8xbf16>
    %c0_25 = arith.constant 0 : index
    %c0_26 = arith.constant 0 : index
    %70 = vector.load %arg6[%c0_25, %c0_26] : memref<16x8xbf16, #tpu.memory_space<vmem>>, vector<16x8xbf16>
    tpu.vector_store %arg6[%c0_25, %c0_26], %69 {strides = array<i32>} : memref<16x8xbf16, #tpu.memory_space<vmem>>, vector<16x8xbf16>,
    return
  }
  func.func @transform_0(%arg0: i32) -> (i32, i32) {
    %c0_i32 = arith.constant 0 : i32
    %c0_i32_0 = arith.constant 0 : i32
    return %arg0, %c0_i32 : i32, i32
  }
  func.func @transform_1(%arg0: i32) -> (i32, i32) {
    %c0_i32 = arith.constant 0 : i32
    %c0_i32_0 = arith.constant 0 : i32
    %c0_i32_1 = arith.constant 0 : i32
    return %c0_i32, %c0_i32_0 : i32, i32
  }
  func.func @transform_2(%arg0: i32) -> (i32, i32) {
    %c0_i32 = arith.constant 0 : i32
    %c0_i32_0 = arith.constant 0 : i32
    %c0_i32_1 = arith.constant 0 : i32
    return %c0_i32, %c0_i32_0 : i32, i32
  }
  func.func @transform_3(%arg0: i32) -> (i32, i32) {
    %c0_i32 = arith.constant 0 : i32
    %c0_i32_0 = arith.constant 0 : i32
    %c0_i32_1 = arith.constant 0 : i32
    return %c0_i32, %c0_i32_0 : i32, i32
  }
  func.func @transform_4(%arg0: i32) -> (i32, i32) {
    %c0_i32 = arith.constant 0 : i32
    %c0_i32_0 = arith.constant 0 : i32
    %c0_i32_1 = arith.constant 0 : i32
    return %c0_i32, %c0_i32_0 : i32, i32
  }
  func.func @transform_5(%arg0: i32) -> (i32, i32) {
    %c0_i32 = arith.constant 0 : i32
    %c0_i32_0 = arith.constant 0 : i32
    return %arg0, %c0_i32 : i32, i32
  }
}

</mosaic_0001>

<bundles_post_ra>
// kernel: conv_pallas.1
= control target key start
LH: loop header
LB: loop body
LE: loop exit
PB: predicated region body
PF: predicated region fallthrough
CT: control target
= control target key end

     0   :  { %s681_s18 = smov 0   ;;  %s791_s0 = inlined_call_operand.vmem [shape: bf16[32,8], index: 0, kind: input, shape index: {}]   ;;  %s792_s1 = inlined_call_operand.vmem [shape: bf16[24,16], index: 1, kind: input, shape index: {}]   ;;  %s793_s2 = inlined_call_operand.vmem [shape: f32[1,16], index: 2, kind: input, shape index: {}]   ;;  %s794_s3 = inlined_call_operand.vmem [shape: bf16[48,8], index: 3, kind: input, shape index: {}]   ;;  %s795_s4 = inlined_call_operand.vmem [shape: f32[1,8], index: 4, kind: input, shape index: {}]   ;;  %s796_s5 = inlined_call_operand.vmem [shape: bf16[32,8], index: 5, kind: output, shape index: {}]  }
   0x1 LB: > { %s565_s19 = sadd.s32 4294967295, %s643_s18   ;;  %p569_p0 = scmp.ge.s32.totalorder %s643_s18, 1  ;;  %s643_s18 = sphi %s681_s18, %s15_s18  }
   0x2   : > { %p188_p1 = scmp.lt.s32.totalorder %s643_s18, 3 }
   0x4   : > { %p189_p2 = pnand %p569_p0, %p188_p1 }
   0x5   : > { %s570_s20 = sshll.u32 (!%p189_p2), %s565_s19, 1  ;;  %s647_s29 = smov (!%p189_p2), 8  }
   0x6   : > { %192 = sbr.rel (%p189_p2) target bundleno = 671 (0x29f), region = 40  ;;  %p217_p3 = scmp.lt.s32.totalorder (!%p189_p2), %s570_s20, 3 }
   0x7   : > { %s649_s30 = smov (!%p189_p2), 16   ;;  %s650_s14 = smov (!%p189_p2), 32  }
   0xb   : > { %v231_v0 = vlaneseq  ;;  %vm348_vm0 = vcmask 1043456   ;;  %v645_v2 = vmov 0.0   ;;  %v632_v3 = vld [vmem:[%s792_s1 + $0x8] ss:$0 sps:$4 sm:$0xff]   ;;  %s812_s20 = smov (!%p217_p3, %s570_s20), 3  ;;  %v633_v7 = vld [vmem:[%s792_s1] sm:$0xff]  }
   0xc   : > { %599 = vmatprep.subr.bf16.mxu0 %v645_v2  ;;  %607 = vmatprep.subr.bf16.mxu1 %v645_v2  ;;  %v350_v6 = vsel %vm348_vm0, %v632_v3, 0  ;;  %s571_s23 = sshll.u32 %s812_s20, 2  ;;  %vm296_vm1 = vsmask.f32 7424  ;;  %vm646_vm3 = vmmov 0   ;;  %vm295_vm8 = vcmask 1047552  }
   0xd   : > { %v232_v1 = vshrl.u32 %v231_v0, 7  ;;  %600 = vmatpush3.bf16.msra.mxu0 %v350_v6  ;;  %s220_s28 = scalar_lea.vmem %s791_s0, %s571_s23  ;;  %603 = vmatprep.mubr.msk.bf16.mxu0 %vm646_vm3, %v645_v2  ;;  %v648_v15 = vmov 0   ;;  %vm730_vm12 = vmand %vm295_vm8, %vm296_vm1  ;;  %vm273_vm14 = vcmask 1040384   ;;  %vm274_vm15 = vsmask.f32 256  ;;  %v634_v38 = vld [vmem:[%s794_s3 + $0x10] sm:$0xff]   ;;  %s226_s21 = scalar_lea.vmem %s796_s5, %s571_s23 }
   0xe   : > { %601 = vmatprep.subr.bf16.mxu0 %v645_v2  ;;  %v631_v10 = vld [vmem:[%s220_s28] sm:$0xff]   ;;  %613 = vmatprep.mubr.msk.bf16.mxu1 %vm646_vm3, %v645_v2  ;;  %vm743_vm0 = vmand %vm273_vm14, %vm274_vm15  ;;  %vm323_vm3 = vcmask 130048   ;;  %v635_v39 = vld [vmem:[%s794_s3 + $0x8] sm:$0xff]  }
   0xf   : > { %v233_v4 = vadd.s32 8, %v232_v1  ;;  %v238_v5 = vand.u32 3, %v232_v1  ;;  %314 = vrot.lane.b32.xlu0 %v631_v10, %s647_s29  ;;  %v269_v13 = vshll.u32 %v631_v10, 16  ;;  %v266_v14 = vshrl.u32 %v631_v10, 16  ;;  %608 = vmatpush3.bf16.msra.mxu1 %v634_v38  ;;  %v577_v40 = vld [vmem:[%s793_s2] ss:$0 sm:$0xff] }
  0x10   : > { %609 = vmatprep.subr.bf16.mxu1 %v645_v2  ;;  %v636_v42 = vld [vmem:[%s794_s3] sm:$0xff]  }
  0x11   : > { %v245_v8 = vand.u32 3, %v233_v4  ;;  %vm705_vm2 = vcmp.lt.s32.totalorder %v238_v5, 3  ;;  %vm711_vm4 = vcmp.ge.s32.totalorder %v238_v5, 1  ;;  %602 = vmatpush3.bf16.msra.mxu0 %v633_v7  ;;  %v292_v18 = vrot.slane %v269_v13, 1  ;;  %v581_v1 = vld [vmem:[%s795_s4] ss:$0 sm:$0xff] }
  0x12   : > { %vm305_vm6 = vmpackc.low %vm705_vm2, %vm705_vm2  ;;  %v268_v20 = vrot.slane %v266_v14, 7  ;;  %vm319_vm2 = vcmask 64512  }
  0x13   : > { %vm300_vm5 = vcmp.lt.s32.totalorder %v245_v8, 3  ;;  %vm719_vm7 = vcmp.ge.s32.totalorder %v245_v8, 1  ;;  %v307_v16 = vsel %vm305_vm6, 65537, %v648_v15  ;;  %vm283_vm10 = vmpackc.low %vm711_vm4, %vm711_vm4  ;;  %v293_v24 = vor.u32 %v292_v18, %v266_v14  ;;  %610 = vmatpush3.bf16.msra.mxu1 %v635_v39 }
  0x14   : > { %vm306_vm9 = vmpackc.low %vm300_vm5, %vm300_vm5  ;;  %v285_v21 = vsel %vm283_vm10, 65537, %v648_v15  ;;  %v271_v27 = vor.u32 %v269_v13, %v268_v20  ;;  %vm345_vm4 = vcmask 195584   ;;  %611 = vmatprep.subr.bf16.mxu1 %v645_v2  ;;  %vm420_vm5 = vcmask 261120  }
  0x15   : > { %v308_v17 = vsel %vm306_vm9, 65537, %v648_v15  ;;  %vm284_vm11 = vmpackc.low %vm719_vm7, %vm719_vm7  ;;  %v298_v28 = vsel %vm730_vm12, %v293_v24, 0  ;;  %vm454_vm6 = vcmask 392192   ;;  %vm506_vm7 = vcmask 60416  }
  0x16   : > { %v576_v19 = vcombine.low %v307_v16, %v308_v17  ;;  %v286_v23 = vsel %vm284_vm11, 65537, %v648_v15  ;;  %v276_v33 = vsel %vm743_vm0, 0, %v271_v27 }
  0x17   : > { %v575_v26 = vcombine.low %v285_v21, %v286_v23  ;;  %612 = vmatpush3.bf16.msra.mxu1 %v636_v42 }
  0x18   : > { %vm734_vm13 = vcmp.ne.s16.totalorder %v576_v19, 0 }
  0x19   : > { %v313_v29 = vsel %vm734_vm13, %v298_v28, 0  ;;  %vm747_vm1 = vcmp.ne.s16.totalorder %v575_v26, 0 }
  0x1a   : > { %317 = vrot.lane.b32.xlu0 %v313_v29, %s649_s30  ;;  %v291_v34 = vsel %vm747_vm1, %v276_v33, 0 }
  0x81   : > { %v315_v32 = vpop.permute.xlu0 %314 }
  0x82   : > { %v322_v35 = vsel %vm319_vm2, %v291_v34, %v315_v32 }
  0x8c   : > { %v318_v36 = vpop.permute.xlu0 %317 }
  0x8d   : > { %v325_v37 = vsel %vm323_vm3, %v322_v35, %v318_v36 }
  0x8e   : > { %604 = vmatmul.mubr.msk.bf16.vlgmr.msra.gmra.mxu0 %vm345_vm4, %v325_v37 }
 0x14e   : > { %v386_v41 = vpop.f32.mrf.mxu0 }
 0x14f   : > { %v387_v44 = vadd.f32 %v577_v40, %v386_v41 }
 0x150   : > { %v605_v43 = vpop.f32.mrf.mxu0 }
 0x151   : > { %v393_v48 = vmax.f32 %v387_v44, 0.0 }
 0x152   : > { %v389_v45 = vpop.f32.mrf.mxu0 }
 0x153   : > { %v390_v46 = vadd.f32 %v577_v40, %v389_v45 }
 0x154   : > { %v606_v47 = vpop.f32.mrf.mxu0 }
 0x155   : > { %v394_v49 = vmax.f32 %v390_v46, 0.0 }
 0x157   : > { %v395_v50 = vpack.c.bf16 %v394_v49, %v393_v48 }
 0x159   : > { %v400_v51 = vshll.u32 %v395_v50, 16  ;;  %412 = vrot.lane.b32.xlu1 %v395_v50, %s649_s30  ;;  %v397_v52 = vshrl.u32 %v395_v50, 16 }
 0x15b   : > { %v406_v53 = vrot.slane %v400_v51, 1  ;;  %v399_v54 = vrot.slane %v397_v52, 7 }
 0x15d   : > { %v407_v55 = vor.u32 %v406_v53, %v397_v52  ;;  %v402_v56 = vor.u32 %v400_v51, %v399_v54 }
 0x15f   : > { %v409_v57 = vsel %vm730_vm12, %v407_v55, 0  ;;  %v404_v60 = vsel %vm743_vm0, 0, %v402_v56 }
 0x160   : > { %v410_v58 = vsel %vm734_vm13, %v409_v57, 0  ;;  %v405_v61 = vsel %vm747_vm1, %v404_v60, 0 }
 0x161   : > { %415 = vrot.lane.b32.xlu1 %v410_v58, %s650_s14 }
 0x1cb   : > { %v413_v59 = vpop.permute.xlu1 %412 }
 0x1cc   : > { %v419_v62 = vsel %vm323_vm3, %v405_v61, %v413_v59 }
 0x1d3   : > { %v416_v63 = vpop.permute.xlu1 %415 }
 0x1d4   : > { %v422_v0 = vsel %vm420_vm5, %v419_v62, %v416_v63 }
 0x1d5   : > { %614 = vmatmul.mubr.msk.bf16.vlgmr.msra.gmra.mxu1 %vm454_vm6, %v422_v0 }
 0x295   : > { %v491_v2 = vpop.f32.mrf.mxu1 }
 0x296   : > { %v492_v3 = vadd.f32 %v581_v1, %v491_v2 }
 0x297   : > { %v615_v4 = vpop.f32.mrf.mxu1 }
 0x298   : > { %v590_v5 = vpack.c.bf16 %v492_v3, %v492_v3 }
 0x299   : > { %v494_v6 = vpop.f32.mrf.mxu1 }
 0x29a   : > { %507 = vst.msk [vmem:[%s226_s21] sm:$0xf] %vm506_vm7, %v590_v5  ;;  %v495_v7 = vadd.f32 %v581_v1, %v494_v6 }
 0x29b   : > { %v616_v8 = vpop.f32.mrf.mxu1 }
 0x29c   : > { %v591_v9 = vpack.c.bf16 %v495_v7, %v495_v7 }
 0x29e   : > { %508 = vst.msk [vmem:[%s226_s21 + $0x4] sm:$0xf] %vm506_vm7, %v591_v9 }
 0x29f PF: > { %s15_s18 = sadd.s32 1, %s643_s18  }
 0x2a0   : > { %p12_p4 = scmp.ge.s32.totalorder %s15_s18, 4  }
 0x2a2   :  { %14 = sbr.rel (!%p12_p4) target bundleno = 1 (0x1), region = 70 }

</bundles_post_ra>
